<compile_context>
chip_gen: v7x
topology: tpu7x:2x2x1
jax: 0.10.0
libtpu: 0.0.40
codegen_flags: <defaults>
</compile_context>

<pallas_src>
import jax
import jax.numpy as jnp
from jax import lax
from jax.experimental import pallas as pl
from jax.experimental.pallas import tpu as pltpu

NUM_FEATURES = 6
_LANES = 128


def _sgldm_kernel(x_ref, o_ref):
    # x_ref: (TB, H, W) block of grayscale images.
    # o_ref: (TB, 1, 128) lane-dense feature rows (lanes 0..5 used).
    img = x_ref[...].astype(jnp.float32)
    tb, H, W = img.shape
    n = H * W

    # shifted[b, i, j] = img[b, i+1, j+1] if in bounds else 0
    # (exactly the F.pad / slice construction of the reference module)
    zrow = jnp.zeros((tb, 1, W), jnp.float32)
    zcol = jnp.zeros((tb, H, 1), jnp.float32)
    shifted = jnp.concatenate([img[:, 1:, :], zrow], axis=1)   # img[b, i+1, j]
    shifted = jnp.concatenate([shifted[:, :, 1:], zcol], axis=2)  # img[b, i+1, j+1]
    diff = jnp.abs(img - shifted)

    # Per-image reduction over the two image axes (lane axis, then sublane
    # axis), vectorized across the TB batch dim.
    def _reduce(fn, v):
        return fn(fn(v, axis=2, keepdims=True), axis=1, keepdims=True)  # (TB,1,1)

    dmin = _reduce(jnp.min, diff)
    dmax = _reduce(jnp.max, diff)
    inv = 1.0 / (dmax - dmin + 1e-6)
    dn = (diff - dmin) * inv                     # min-max normalized diff

    s1 = _reduce(jnp.sum, dn)                    # sum(d)
    s2 = _reduce(jnp.sum, dn * dn)               # sum(d^2)
    ent = _reduce(jnp.sum, dn * jnp.log(dn + 1e-8))

    mean = s1 / n
    energy = s2
    entropy = -ent
    # contrast = sum((d - mean)^2) = sum(d^2) - sum(d)^2 / n  (single pass)
    contrast = jnp.maximum(s2 - s1 * s1 / n, 0.0)
    var = contrast / (n - 1)                     # Bessel, as torch.Tensor.std()
    std = jnp.sqrt(var)
    smooth = 1.0 - 1.0 / (1.0 + var)

    # Scatter the 6 per-image scalars into lanes 0..5 of each image's row.
    lane = lax.broadcasted_iota(jnp.int32, (tb, 1, _LANES), 2)
    out = jnp.zeros((tb, 1, _LANES), jnp.float32)
    for idx, f in enumerate((mean, std, energy, entropy, contrast, smooth)):
        out = jnp.where(lane == idx, f, out)     # f: (TB,1,1) broadcasts
    o_ref[...] = out


def sgldm_extract(x, *, tile_b=8):
    """x: (B, 1, H, W) -> (B, NUM_FEATURES) float32."""
    B, C, H, W = x.shape
    assert C == 1, "SGLDM input must be a single-channel grayscale image"
    xi = x.reshape(B, H, W)   # keep the input dtype; the kernel upcasts

    # Batch TB images per grid step, capped so a block stays ~2 MiB (fits the
    # default scoped VMEM with double buffering on every TPU generation).
    bytes_per_img = H * W * max(int(jnp.dtype(xi.dtype).itemsize), 4)
    tb = max(1, min(tile_b, B, (2 << 20) // max(bytes_per_img, 1)))
    num_blocks = (B + tb - 1) // tb
    bp = num_blocks * tb
    if bp != B:
        # Pad with zero images; they produce finite (all-zero) features and
        # are sliced off below.
        xi = jnp.pad(xi, ((0, bp - B), (0, 0), (0, 0)))

    out = pl.pallas_call(
        _sgldm_kernel,
        out_shape=jax.ShapeDtypeStruct((bp, 1, _LANES), jnp.float32),
        grid_spec=pltpu.PrefetchScalarGridSpec(
            num_scalar_prefetch=0,
            grid=(num_blocks,),
            in_specs=[pl.BlockSpec((tb, H, W), lambda g: (g, 0, 0))],
            out_specs=pl.BlockSpec((tb, 1, _LANES), lambda g: (g, 0, 0)),
        ),
        compiler_params=pltpu.CompilerParams(
            # Blocks are fully independent -> shard across TensorCores on v7x;
            # harmless on single-TC v5e/v6e.
            dimension_semantics=("parallel",)),
    )(xi)
    return out[:B, 0, :NUM_FEATURES]


def sgldm_reference(x):
    """Pure-JAX reference matching the PyTorch forward."""
    B, C, H, W = x.shape
    img = x[:, 0].astype(jnp.float32)                          # (B, H, W)
    shifted = jnp.pad(img[:, 1:, 1:], ((0, 0), (0, 1), (0, 1)))
    diff = jnp.abs(img - shifted)
    dmin = diff.min(axis=(1, 2), keepdims=True)
    dmax = diff.max(axis=(1, 2), keepdims=True)
    diff = (diff - dmin) / (dmax - dmin + 1e-6)
    n = H * W
    mean = diff.mean(axis=(1, 2))
    contrast = ((diff - mean[:, None, None]) ** 2).sum(axis=(1, 2))
    std = jnp.sqrt(contrast / (n - 1))
    energy = (diff ** 2).sum(axis=(1, 2))
    entropy = -(diff * jnp.log(diff + 1e-8)).sum(axis=(1, 2))
    smooth = 1.0 - 1.0 / (1.0 + std ** 2)
    return jnp.stack([mean, std, energy, entropy, contrast, smooth], axis=1)


if __name__ == "__main__":
    key = jax.random.PRNGKey(0)

    # Small case matching the module spec.
    B, C, H, W = 2, 1, 16, 16
    x = jax.random.uniform(key, (B, C, H, W), dtype=jnp.float32)
    feats = jax.block_until_ready(sgldm_extract(x))
    ref = sgldm_reference(x)
    assert feats.shape == (B, NUM_FEATURES), feats.shape
    assert jnp.allclose(feats, ref, rtol=1e-4, atol=1e-4), (feats, ref)

    # Exercise the multi-block + batch-padding path (B=10 -> 2 blocks of 8).
    x2 = jax.random.uniform(jax.random.PRNGKey(1), (10, 1, 16, 16),
                            dtype=jnp.float32)
    feats2 = jax.block_until_ready(sgldm_extract(x2))
    ref2 = sgldm_reference(x2)
    assert feats2.shape == (10, NUM_FEATURES), feats2.shape
    assert jnp.allclose(feats2, ref2, rtol=1e-4, atol=1e-4), (feats2, ref2)

    print("KERNEL_OK")
</pallas_src>

<mosaic_0001>
module attributes {stable_mosaic.version = 11 : i64} {
  func.func @_sgldm_kernel(%arg0: i32, %arg1: memref<2x16x16xf32, #tpu.memory_space<vmem>>, %arg2: memref<2x1x128xf32, #tpu.memory_space<vmem>>) attributes {dimension_semantics = [#tpu.dimension_semantics<parallel>], iteration_bounds = array<i64: 1>, scalar_prefetch = 0 : i64, scratch_operands = 0 : i64, tpu.core_type = #tpu.core_type<tc>, window_params = [{transform_indices = @transform_0, window_bounds = array<i64: 2, 16, 16>}, {transform_indices = @transform_1, window_bounds = array<i64: 2, 1, 128>}]} {
    %c0 = arith.constant 0 : index
    %c0_0 = arith.constant 0 : index
    %c0_1 = arith.constant 0 : index
    %0 = vector.load %arg1[%c0, %c0_0, %c0_1] : memref<2x16x16xf32, #tpu.memory_space<vmem>>, vector<2x16x16xf32>
    %cst = arith.constant 0.000000e+00 : f32
    %1 = vector.broadcast %cst : f32 to vector<2x1x16xf32>
    %cst_2 = arith.constant 0.000000e+00 : f32
    %2 = vector.broadcast %cst_2 : f32 to vector<2x16x1xf32>
    %3 = vector.extract_strided_slice %0 {offsets = [0, 1, 0], sizes = [2, 15, 16], strides = [1, 1, 1]} : vector<2x16x16xf32> to vector<2x15x16xf32>
    %4 = tpu.concatenate %3, %1 in 1 : vector<2x15x16xf32>, vector<2x1x16xf32> -> vector<2x16x16xf32>
    %5 = vector.extract_strided_slice %4 {offsets = [0, 0, 1], sizes = [2, 16, 15], strides = [1, 1, 1]} : vector<2x16x16xf32> to vector<2x16x15xf32>
    %6 = tpu.concatenate %5, %2 in 2 : vector<2x16x15xf32>, vector<2x16x1xf32> -> vector<2x16x16xf32>
    %7 = arith.subf %0, %6 : vector<2x16x16xf32>
    %8 = math.absf %7 : vector<2x16x16xf32>
    %cst_3 = arith.constant dense<0x7F800000> : vector<2x16xf32>
    %9 = vector.multi_reduction <minimumf>, %8, %cst_3 [2] : vector<2x16x16xf32> to vector<2x16xf32>
    %10 = vector.shape_cast %9 : vector<2x16xf32> to vector<2x16x1xf32>
    %cst_4 = arith.constant dense<0x7F800000> : vector<2x1xf32>
    %11 = vector.multi_reduction <minimumf>, %10, %cst_4 [1] : vector<2x16x1xf32> to vector<2x1xf32>
    %12 = vector.shape_cast %11 : vector<2x1xf32> to vector<2x1x1xf32>
    %cst_5 = arith.constant dense<0xFF800000> : vector<2x16xf32>
    %13 = vector.multi_reduction <maximumf>, %8, %cst_5 [2] : vector<2x16x16xf32> to vector<2x16xf32>
    %14 = vector.shape_cast %13 : vector<2x16xf32> to vector<2x16x1xf32>
    %cst_6 = arith.constant dense<0xFF800000> : vector<2x1xf32>
    %15 = vector.multi_reduction <maximumf>, %14, %cst_6 [1] : vector<2x16x1xf32> to vector<2x1xf32>
    %16 = vector.shape_cast %15 : vector<2x1xf32> to vector<2x1x1xf32>
    %17 = arith.subf %16, %12 : vector<2x1x1xf32>
    %cst_7 = arith.constant 9.99999997E-7 : f32
    %18 = vector.broadcast %cst_7 : f32 to vector<2x1x1xf32>
    %19 = arith.addf %17, %18 : vector<2x1x1xf32>
    %cst_8 = arith.constant 1.000000e+00 : f32
    %20 = vector.broadcast %cst_8 : f32 to vector<2x1x1xf32>
    %21 = arith.divf %20, %19 : vector<2x1x1xf32>
    %22 = vector.broadcast %12 : vector<2x1x1xf32> to vector<2x16x16xf32>
    %23 = arith.subf %8, %22 : vector<2x16x16xf32>
    %24 = vector.broadcast %21 : vector<2x1x1xf32> to vector<2x16x16xf32>
    %25 = arith.mulf %23, %24 : vector<2x16x16xf32>
    %cst_9 = arith.constant dense<0.000000e+00> : vector<2x16xf32>
    %26 = vector.multi_reduction <add>, %25, %cst_9 [2] : vector<2x16x16xf32> to vector<2x16xf32>
    %27 = vector.shape_cast %26 : vector<2x16xf32> to vector<2x16x1xf32>
    %cst_10 = arith.constant dense<0.000000e+00> : vector<2x1xf32>
    %28 = vector.multi_reduction <add>, %27, %cst_10 [1] : vector<2x16x1xf32> to vector<2x1xf32>
    %29 = vector.shape_cast %28 : vector<2x1xf32> to vector<2x1x1xf32>
    %30 = arith.mulf %25, %25 : vector<2x16x16xf32>
    %cst_11 = arith.constant dense<0.000000e+00> : vector<2x16xf32>
    %31 = vector.multi_reduction <add>, %30, %cst_11 [2] : vector<2x16x16xf32> to vector<2x16xf32>
    %32 = vector.shape_cast %31 : vector<2x16xf32> to vector<2x16x1xf32>
    %cst_12 = arith.constant dense<0.000000e+00> : vector<2x1xf32>
    %33 = vector.multi_reduction <add>, %32, %cst_12 [1] : vector<2x16x1xf32> to vector<2x1xf32>
    %34 = vector.shape_cast %33 : vector<2x1xf32> to vector<2x1x1xf32>
    %cst_13 = arith.constant 9.99999993E-9 : f32
    %35 = vector.broadcast %cst_13 : f32 to vector<2x16x16xf32>
    %36 = arith.addf %25, %35 : vector<2x16x16xf32>
    %37 = math.log %36 : vector<2x16x16xf32>
    %38 = arith.mulf %25, %37 : vector<2x16x16xf32>
    %cst_14 = arith.constant dense<0.000000e+00> : vector<2x16xf32>
    %39 = vector.multi_reduction <add>, %38, %cst_14 [2] : vector<2x16x16xf32> to vector<2x16xf32>
    %40 = vector.shape_cast %39 : vector<2x16xf32> to vector<2x16x1xf32>
    %cst_15 = arith.constant dense<0.000000e+00> : vector<2x1xf32>
    %41 = vector.multi_reduction <add>, %40, %cst_15 [1] : vector<2x16x1xf32> to vector<2x1xf32>
    %42 = vector.shape_cast %41 : vector<2x1xf32> to vector<2x1x1xf32>
    %cst_16 = arith.constant 2.560000e+02 : f32
    %43 = vector.broadcast %cst_16 : f32 to vector<2x1x1xf32>
    %44 = arith.divf %29, %43 : vector<2x1x1xf32>
    %cst_17 = arith.constant 0.000000e+00 : f32
    %45 = vector.broadcast %cst_17 : f32 to vector<2x1x1xf32>
    %46 = arith.subf %45, %42 : vector<2x1x1xf32>
    %47 = arith.mulf %29, %29 : vector<2x1x1xf32>
    %cst_18 = arith.constant 2.560000e+02 : f32
    %48 = vector.broadcast %cst_18 : f32 to vector<2x1x1xf32>
    %49 = arith.divf %47, %48 : vector<2x1x1xf32>
    %50 = arith.subf %34, %49 : vector<2x1x1xf32>
    %cst_19 = arith.constant 0.000000e+00 : f32
    %51 = vector.broadcast %cst_19 : f32 to vector<2x1x1xf32>
    %52 = arith.maximumf %50, %51 : vector<2x1x1xf32>
    %cst_20 = arith.constant 2.550000e+02 : f32
    %53 = vector.broadcast %cst_20 : f32 to vector<2x1x1xf32>
    %54 = arith.divf %52, %53 : vector<2x1x1xf32>
    %55 = math.sqrt %54 : vector<2x1x1xf32>
    %cst_21 = arith.constant 1.000000e+00 : f32
    %56 = vector.broadcast %cst_21 : f32 to vector<2x1x1xf32>
    %57 = arith.addf %56, %54 : vector<2x1x1xf32>
    %cst_22 = arith.constant 1.000000e+00 : f32
    %58 = vector.broadcast %cst_22 : f32 to vector<2x1x1xf32>
    %59 = arith.divf %58, %57 : vector<2x1x1xf32>
    %cst_23 = arith.constant 1.000000e+00 : f32
    %60 = vector.broadcast %cst_23 : f32 to vector<2x1x1xf32>
    %61 = arith.subf %60, %59 : vector<2x1x1xf32>
    %62 = tpu.iota {dimensions = array<i32: 2>} : vector<2x1x128xi32>
    %cst_24 = arith.constant 0.000000e+00 : f32
    %63 = vector.broadcast %cst_24 : f32 to vector<2x1x128xf32>
    %c0_i32 = arith.constant 0 : i32
    %64 = vector.broadcast %c0_i32 : i32 to vector<2x1x128xi32>
    %65 = arith.cmpi eq, %62, %64 : vector<2x1x128xi32>
    %66 = vector.shape_cast %44 : vector<2x1x1xf32> to vector<2x1x1xf32>
    %67 = vector.broadcast %66 : vector<2x1x1xf32> to vector<2x1x128xf32>
    %68 = arith.select %65, %67, %63 : vector<2x1x128xi1>, vector<2x1x128xf32>
    %c1_i32 = arith.constant 1 : i32
    %69 = vector.broadcast %c1_i32 : i32 to vector<2x1x128xi32>
    %70 = arith.cmpi eq, %62, %69 : vector<2x1x128xi32>
    %71 = vector.shape_cast %55 : vector<2x1x1xf32> to vector<2x1x1xf32>
    %72 = vector.broadcast %71 : vector<2x1x1xf32> to vector<2x1x128xf32>
    %73 = arith.select %70, %72, %68 : vector<2x1x128xi1>, vector<2x1x128xf32>
    %c2_i32 = arith.constant 2 : i32
    %74 = vector.broadcast %c2_i32 : i32 to vector<2x1x128xi32>
    %75 = arith.cmpi eq, %62, %74 : vector<2x1x128xi32>
    %76 = vector.shape_cast %34 : vector<2x1x1xf32> to vector<2x1x1xf32>
    %77 = vector.broadcast %76 : vector<2x1x1xf32> to vector<2x1x128xf32>
    %78 = arith.select %75, %77, %73 : vector<2x1x128xi1>, vector<2x1x128xf32>
    %c3_i32 = arith.constant 3 : i32
    %79 = vector.broadcast %c3_i32 : i32 to vector<2x1x128xi32>
    %80 = arith.cmpi eq, %62, %79 : vector<2x1x128xi32>
    %81 = vector.shape_cast %46 : vector<2x1x1xf32> to vector<2x1x1xf32>
    %82 = vector.broadcast %81 : vector<2x1x1xf32> to vector<2x1x128xf32>
    %83 = arith.select %80, %82, %78 : vector<2x1x128xi1>, vector<2x1x128xf32>
    %c4_i32 = arith.constant 4 : i32
    %84 = vector.broadcast %c4_i32 : i32 to vector<2x1x128xi32>
    %85 = arith.cmpi eq, %62, %84 : vector<2x1x128xi32>
    %86 = vector.shape_cast %52 : vector<2x1x1xf32> to vector<2x1x1xf32>
    %87 = vector.broadcast %86 : vector<2x1x1xf32> to vector<2x1x128xf32>
    %88 = arith.select %85, %87, %83 : vector<2x1x128xi1>, vector<2x1x128xf32>
    %c5_i32 = arith.constant 5 : i32
    %89 = vector.broadcast %c5_i32 : i32 to vector<2x1x128xi32>
    %90 = arith.cmpi eq, %62, %89 : vector<2x1x128xi32>
    %91 = vector.shape_cast %61 : vector<2x1x1xf32> to vector<2x1x1xf32>
    %92 = vector.broadcast %91 : vector<2x1x1xf32> to vector<2x1x128xf32>
    %93 = arith.select %90, %92, %88 : vector<2x1x128xi1>, vector<2x1x128xf32>
    %c0_25 = arith.constant 0 : index
    %c0_26 = arith.constant 0 : index
    %c0_27 = arith.constant 0 : index
    %94 = vector.load %arg2[%c0_25, %c0_26, %c0_27] : memref<2x1x128xf32, #tpu.memory_space<vmem>>, vector<2x1x128xf32>
    tpu.vector_store %arg2[%c0_25, %c0_26, %c0_27], %93 {strides = array<i32>} : memref<2x1x128xf32, #tpu.memory_space<vmem>>, vector<2x1x128xf32>,
    return
  }
  func.func @transform_0(%arg0: i32) -> (i32, i32, i32) {
    %c0_i32 = arith.constant 0 : i32
    %c0_i32_0 = arith.constant 0 : i32
    %c0_i32_1 = arith.constant 0 : i32
    return %arg0, %c0_i32, %c0_i32_0 : i32, i32, i32
  }
  func.func @transform_1(%arg0: i32) -> (i32, i32, i32) {
    %c0_i32 = arith.constant 0 : i32
    %c0_i32_0 = arith.constant 0 : i32
    %c0_i32_1 = arith.constant 0 : i32
    return %arg0, %c0_i32, %c0_i32_0 : i32, i32, i32
  }
}

</mosaic_0001>

<bundles_post_ra>
// kernel: tpu_custom_call.1
= control target key start
LH: loop header
LB: loop body
LE: loop exit
PB: predicated region body
PF: predicated region fallthrough
CT: control target
= control target key end

     0   :  { %6 = vsyncpa [#allocation3], 0  ;;  %s476_s0 = inlined_call_operand.hbm [shape: f32[2,16,16], index: 0, kind: input, shape index: {}]   ;;  %s477_s1 = inlined_call_operand.hbm [shape: f32[2,1,128], index: 1, kind: output, shape index: {}]  }
   0x1   :  { %7 = vsyncpa [#allocation4], 0  ;;  %s388_s6 = smov [#allocation2]   ;;  %s340_s10 = scalar_lea.hbm %s476_s0, 512 }
   0x2   :  { %s13_s7 = sshll.u32 %s388_s6, 4  ;;  %p341_p0 = scmp.ne.s32.totalorder %s476_s0, %s340_s10  ;;  %s14_s7 = int_to_ptr.vmem [resolvable:$true] %s13_s7 }
   0x3   :  { %p344_p1 = scmp.lt.u32.totalorder %s340_s10, %s476_s0 }
   0x5   :  { %p346_p2 = pnand %p344_p1, %p341_p0 }
   0x7   :  { %349 = shalt.err (!%p346_p2)
}
   0x8   :  { %s350_s15 = scalar_lea.vmem %s14_s7, 512  ;;  %p355_p4 = scmp.lt.s32.totalorder %s14_s7, %s14_s7 }
   0x9   :  { %p351_p3 = scmp.ne.s32.totalorder %s14_s7, %s350_s15  ;;  %p356_p5 = scmp.lt.s32.totalorder %s350_s15, %s350_s15 }
   0xb   :  { %p357_p6 = por %p356_p5, %p355_p4 }
   0xd   :  { %p358_p7 = pnand %p357_p6, %p351_p3 }
   0xf   :  { %361 = shalt.err (!%p358_p7)
}
  0x10   :  { %s389_s16 = smov 128   ;;  %s390_s17 = smov 8  }
  0x11   :  { %19 = dma.hbm_to_vmem [thread:$0]  %s476_s0, 512, %s14_s7, [#allocation3], %s389_s16, %s389_s16, %s390_s17  }
  0x12   :  { %384 = dma.done.wait [#allocation3], 512  }
  0x13   :  { %385 = vsyncadd [#allocation3], 4294966784  ;;  %v23_v0 = vld [vmem:[#allocation2] sm:$0xff]  ;;  %v24_v1 = vld [vmem:[#allocation2 + $0x8] sm:$0xff]  ;;  %vm31_vm0 = vcmask 1046528   ;;  %s391_s20 = smov 127  }
  0x14   :  { %v25_v2 = vld [vmem:[#allocation2 + $0x10] sm:$0xff]  ;;  %v32_v3 = vrot.slane %v23_v0, 1  ;;  %v33_v4 = vrot.slane %v24_v1, 1  ;;  %v26_v5 = vld [vmem:[#allocation2 + $0x18] sm:$0xff]  ;;  %vm56_vm1 = vcmask 121856   ;;  %vm69_vm2 = vcmask 130048  }
  0x15   :  { %v35_v6 = vrot.slane %v25_v2, 1  ;;  %v36_v7 = vrot.slane %v26_v5, 1  ;;  %s392_s0 = smov [#allocation5]  }
  0x16   :  { %v34_v8 = vsel %vm31_vm0, %v32_v3, %v33_v4  ;;  %v40_v10 = vsel %vm31_vm0, %v33_v4, 0.0  ;;  %s301_s21 = sshll.u32 %s392_s0, 4  ;;  %s302_s21 = int_to_ptr.vmem [resolvable:$true] %s301_s21 }
  0x17   :  { %44 = vrot.lane.b32.xlu0 %v34_v8, %s391_s20  ;;  %v37_v9 = vsel %vm31_vm0, %v35_v6, %v36_v7  ;;  %v41_v11 = vsel %vm31_vm0, %v36_v7, 0.0  ;;  %s362_s22 = scalar_lea.vmem %s302_s21, 32  ;;  %p367_p9 = scmp.lt.s32.totalorder %s302_s21, %s302_s21 }
  0x18   :  { %48 = vrot.lane.b32.xlu1 %v37_v9, %s391_s20  ;;  %p363_p8 = scmp.ne.s32.totalorder %s302_s21, %s362_s22  ;;  %p368_p10 = scmp.lt.s32.totalorder %s362_s22, %s362_s22 }
  0x1a   :  { %p369_p11 = por %p368_p10, %p367_p9 }
  0x1b   :  { %46 = vrot.lane.b32.xlu0 %v40_v10, %s391_s20 }
  0x1c   :  { %50 = vrot.lane.b32.xlu1 %v41_v11, %s391_s20  ;;  %p370_p12 = pnand %p369_p11, %p363_p8 }
  0x89   :  { %v45_v12 = vpop.permute.xlu0 %44 }
  0x8a   :  { %v57_v13 = vsel %vm56_vm1, %v45_v12, 0.0  ;;  %v49_v14 = vpop.permute.xlu1 %48 }
  0x8b   :  { %v61_v15 = vsub.f32 %v23_v0, %v57_v13  ;;  %v59_v16 = vsel %vm56_vm1, %v49_v14, 0.0 }
  0x8c   :  { %v63_v17 = vsub.f32 %v25_v2, %v59_v16 }
  0x8d   :  { %v417_v18 = vand.u32 2147483647, %v61_v15  ;;  %v47_v19 = vpop.permute.xlu0 %46 }
  0x8e   :  { %v419_v20 = vand.u32 2147483647, %v63_v17  ;;  %v58_v21 = vsel %vm56_vm1, %v47_v19, 0.0  ;;  %v51_v22 = vpop.permute.xlu1 %50 }
  0x8f   :  { %v62_v23 = vsub.f32 %v24_v1, %v58_v21  ;;  %v70_v24 = vsel %vm69_vm2, %v417_v18, inf  ;;  %v60_v25 = vsel %vm56_vm1, %v51_v22, 0.0  ;;  %v96_v32 = vsel %vm69_vm2, %v417_v18, -inf }
  0x90   :  { %71 = vmin.xlane.f32.xlu0 %v70_v24  ;;  %v64_v26 = vsub.f32 %v26_v5, %v60_v25  ;;  %v76_v28 = vsel %vm69_vm2, %v419_v20, inf  ;;  %v102_v34 = vsel %vm69_vm2, %v419_v20, -inf }
  0x91   :  { %v66_v27 = vand.u32 2147483647, %v62_v23 }
  0x92   :  { %v425_v29 = vand.u32 2147483647, %v64_v26 }
  0x93   :  { %v73_v30 = vsel %vm69_vm2, %v66_v27, inf  ;;  %v99_v33 = vsel %vm69_vm2, %v66_v27, -inf }
  0x94   :  { %77 = vmin.xlane.f32.xlu0 %v76_v28  ;;  %74 = vmin.xlane.f32.xlu1 %v73_v30  ;;  %v79_v31 = vsel %vm69_vm2, %v425_v29, inf  ;;  %v105_v35 = vsel %vm69_vm2, %v425_v29, -inf }
  0x98   :  { %80 = vmin.xlane.f32.xlu0 %v79_v31  ;;  %97 = vmax.xlane.f32.xlu1 %v96_v32 }
  0x9c   :  { %100 = vmax.xlane.f32.xlu0 %v99_v33  ;;  %103 = vmax.xlane.f32.xlu1 %v102_v34 }
  0xa0   :  { %106 = vmax.xlane.f32.xlu0 %v105_v35 }
 0x11d   :  { %v72_v36 = vpop.xlane.xlu0 %71 }
 0x121   :  { %v75_v37 = vpop.xlane.xlu1 %74  ;;  %v78_v38 = vpop.xlane.xlu0 %77 }
 0x122   :  { %v82_v39 = vmin.f32 %v72_v36, %v75_v37 }
 0x124   :  { %v83_v40 = vrot.slane %v82_v39, 4 }
 0x125   :  { %v81_v41 = vpop.xlane.xlu0 %80  ;;  %v98_v44 = vpop.xlane.xlu1 %97 }
 0x126   :  { %v84_v42 = vmin.f32 %v82_v39, %v83_v40  ;;  %v89_v43 = vmin.f32 %v78_v38, %v81_v41 }
 0x128   :  { %v90_v45 = vrot.slane %v89_v43, 4  ;;  %v85_v47 = vrot.slane %v84_v42, 2 }
 0x129   :  { %v101_v46 = vpop.xlane.xlu0 %100  ;;  %v104_v51 = vpop.xlane.xlu1 %103 }
 0x12a   :  { %v91_v48 = vmin.f32 %v89_v43, %v90_v45  ;;  %v108_v49 = vmax.f32 %v98_v44, %v101_v46  ;;  %v86_v53 = vmin.f32 %v84_v42, %v85_v47 }
 0x12c   :  { %v109_v50 = vrot.slane %v108_v49, 4  ;;  %v92_v54 = vrot.slane %v91_v48, 2  ;;  %v87_v59 = vrot.slane %v86_v53, 1 }
 0x12d   :  { %v107_v52 = vpop.xlane.xlu0 %106 }
 0x12e   :  { %v110_v55 = vmax.f32 %v108_v49, %v109_v50  ;;  %v115_v56 = vmax.f32 %v104_v51, %v107_v52  ;;  %v93_v60 = vmin.f32 %v91_v48, %v92_v54  ;;  %v88_v1 = vmin.f32 %v86_v53, %v87_v59 }
 0x130   :  { %v111_v57 = vrot.slane %v110_v55, 2  ;;  %v116_v58 = vrot.slane %v115_v56, 4  ;;  %v94_v2 = vrot.slane %v93_v60, 1  ;;  %v131_v12 = vsub.f32 %v66_v27, %v88_v1 }
 0x131   :  { %v130_v13 = vsub.f32 %v417_v18, %v88_v1 }
 0x132   :  { %v112_v61 = vmax.f32 %v110_v55, %v111_v57  ;;  %v117_v62 = vmax.f32 %v115_v56, %v116_v58  ;;  %v95_v7 = vmin.f32 %v93_v60, %v94_v2 }
 0x134   :  { %v113_v63 = vrot.slane %v112_v61, 1  ;;  %v118_v0 = vrot.slane %v117_v62, 2  ;;  %v133_v21 = vsub.f32 %v425_v29, %v95_v7  ;;  %v132_v22 = vsub.f32 %v419_v20, %v95_v7 }
 0x136   :  { %v114_v3 = vmax.f32 %v112_v61, %v113_v63  ;;  %v119_v4 = vmax.f32 %v117_v62, %v118_v0 }
 0x138   :  { %v122_v5 = vsub.f32 %v114_v3, %v88_v1  ;;  %v120_v6 = vrot.slane %v119_v4, 1 }
 0x13a   :  { %v124_v8 = vadd.f32 1e-06, %v122_v5  ;;  %v121_v9 = vmax.f32 %v119_v4, %v120_v6 }
 0x13c   :  { %320 = vrcp.f32 %v124_v8  ;;  %v123_v10 = vsub.f32 %v121_v9, %v95_v7 }
 0x13e   :  { %v125_v11 = vadd.f32 1e-06, %v123_v10 }
 0x140   :  { %322 = vrcp.f32 %v125_v11 }
 0x146   :  { %v321_v14 = vpop.eup %320 }
 0x147   :  { %v135_v15 = vmul.f32 %v321_v14, %v131_v12  ;;  %v134_v16 = vmul.f32 %v321_v14, %v130_v13 }
 0x149   :  { %v141_v17 = vsel %vm69_vm2, %v135_v15, 0.0  ;;  %v138_v19 = vsel %vm69_vm2, %v134_v16, 0.0  ;;  %v195_v24 = vadd.f32 1e-08, %v135_v15  ;;  %v194_v25 = vadd.f32 1e-08, %v134_v16 }
 0x14a   :  { %v323_v23 = vpop.eup %322  ;;  %142 = vadd.xlane.f32.xlu0 %v141_v17  ;;  %139 = vadd.xlane.f32.xlu1 %v138_v19  ;;  %v165_v28 = vmul.f32 %v135_v15, %v135_v15  ;;  %v164_v31 = vmul.f32 %v134_v16, %v134_v16 }
 0x14b   :  { %v137_v26 = vmul.f32 %v323_v23, %v133_v21  ;;  %v136_v27 = vmul.f32 %v323_v23, %v132_v22  ;;  %324 = vlog2.f32 %v195_v24 }
 0x14c   :  { %326 = vlog2.f32 %v194_v25  ;;  %v171_v20 = vsel %vm69_vm2, %v165_v28, 0.0  ;;  %v168_v33 = vsel %vm69_vm2, %v164_v31, 0.0 }
 0x14d   :  { %v147_v18 = vsel %vm69_vm2, %v137_v26, 0.0  ;;  %v144_v30 = vsel %vm69_vm2, %v136_v27, 0.0  ;;  %v197_v29 = vadd.f32 1e-08, %v137_v26  ;;  %v196_v32 = vadd.f32 1e-08, %v136_v27 }
 0x14e   :  { %148 = vadd.xlane.f32.xlu0 %v147_v18  ;;  %145 = vadd.xlane.f32.xlu1 %v144_v30  ;;  %v167_v34 = vmul.f32 %v137_v26, %v137_v26  ;;  %v166_v35 = vmul.f32 %v136_v27, %v136_v27 }
 0x14f   :  { %328 = vlog2.f32 %v197_v29 }
 0x150   :  { %330 = vlog2.f32 %v196_v32  ;;  %v177_v36 = vsel %vm69_vm2, %v167_v34, 0.0  ;;  %v174_v37 = vsel %vm69_vm2, %v166_v35, 0.0 }
 0x152   :  { %172 = vadd.xlane.f32.xlu0 %v171_v20  ;;  %169 = vadd.xlane.f32.xlu1 %v168_v33 }
 0x155   :  { %v325_v38 = vpop.eup %324 }
 0x156   :  { %178 = vadd.xlane.f32.xlu0 %v177_v36  ;;  %175 = vadd.xlane.f32.xlu1 %v174_v37  ;;  %v201_v39 = vmul.f32 0.6931472, %v325_v38  ;;  %v327_v40 = vpop.eup %326 }
 0x157   :  { %v199_v42 = vmul.f32 0.6931472, %v327_v40 }
 0x158   :  { %v207_v41 = vmul.f32 %v201_v39, %v135_v15 }
 0x159   :  { %v329_v43 = vpop.eup %328  ;;  %v206_v46 = vmul.f32 %v199_v42, %v134_v16 }
 0x15a   :  { %v331_v44 = vpop.eup %330  ;;  %v213_v45 = vsel %vm69_vm2, %v207_v41, 0.0  ;;  %v205_v47 = vmul.f32 0.6931472, %v329_v43 }
 0x15b   :  { %214 = vadd.xlane.f32.xlu0 %v213_v45  ;;  %v203_v48 = vmul.f32 0.6931472, %v331_v44  ;;  %v210_v49 = vsel %vm69_vm2, %v206_v46, 0.0 }
 0x15c   :  { %v209_v50 = vmul.f32 %v205_v47, %v137_v26  ;;  %211 = vadd.xlane.f32.xlu1 %v210_v49  ;;  %v274_v47 = vlaneseq }
 0x15d   :  { %v208_v51 = vmul.f32 %v203_v48, %v136_v27 }
 0x15e   :  { %v219_v52 = vsel %vm69_vm2, %v209_v50, 0.0 }
 0x15f   :  { %220 = vadd.xlane.f32.xlu0 %v219_v52  ;;  %v216_v53 = vsel %vm69_vm2, %v208_v51, 0.0  ;;  %v275_v52 = vand.u32 127, %v274_v47 }
 0x160   :  { %217 = vadd.xlane.f32.xlu1 %v216_v53 }
 0x161   :  { %vm276_vm3 = vcmp.eq.s32.totalorder %v275_v52, 0  ;;  %vm279_vm4 = vcmp.eq.s32.totalorder %v275_v52, 1  ;;  %vm282_vm6 = vcmp.eq.s32.totalorder %v275_v52, 2  ;;  %vm285_vm8 = vcmp.eq.s32.totalorder %v275_v52, 3 }
 0x162   :  { %vm288_vm9 = vcmp.eq.s32.totalorder %v275_v52, 4  ;;  %vm291_vm10 = vcmp.eq.s32.totalorder %v275_v52, 5 }
 0x1d7   :  { %v140_v54 = vpop.xlane.xlu1 %139  ;;  %v143_v55 = vpop.xlane.xlu0 %142 }
 0x1d8   :  { %v150_v56 = vadd.f32 %v143_v55, %v140_v54 }
 0x1da   :  { %v151_v57 = vrot.slane %v150_v56, 4 }
 0x1db   :  { %v146_v58 = vpop.xlane.xlu1 %145  ;;  %v149_v59 = vpop.xlane.xlu0 %148 }
 0x1dc   :  { %v152_v60 = vadd.f32 %v151_v57, %v150_v56  ;;  %v157_v61 = vadd.f32 %v149_v59, %v146_v58 }
 0x1de   :  { %v153_v62 = vrot.slane %v152_v60, 2  ;;  %v158_v63 = vrot.slane %v157_v61, 4 }
 0x1df   :  { %v170_v0 = vpop.xlane.xlu1 %169  ;;  %v173_v1 = vpop.xlane.xlu0 %172 }
 0x1e0   :  { %v154_v2 = vadd.f32 %v153_v62, %v152_v60  ;;  %v159_v3 = vadd.f32 %v158_v63, %v157_v61  ;;  %v180_v4 = vadd.f32 %v173_v1, %v170_v0 }
 0x1e2   :  { %v155_v5 = vrot.slane %v154_v2, 1  ;;  %v160_v6 = vrot.slane %v159_v3, 2  ;;  %v181_v7 = vrot.slane %v180_v4, 4 }
 0x1e3   :  { %v176_v8 = vpop.xlane.xlu1 %175  ;;  %v179_v9 = vpop.xlane.xlu0 %178 }
 0x1e4   :  { %v156_v10 = vadd.f32 %v155_v5, %v154_v2  ;;  %v161_v11 = vadd.f32 %v160_v6, %v159_v3  ;;  %v182_v12 = vadd.f32 %v181_v7, %v180_v4  ;;  %v187_v13 = vadd.f32 %v179_v9, %v176_v8 }
 0x1e6   :  { %v162_v14 = vrot.slane %v161_v11, 1  ;;  %v183_v15 = vrot.slane %v182_v12, 2  ;;  %v188_v16 = vrot.slane %v187_v13, 4  ;;  %v241_v17 = vmul.f32 %v156_v10, %v156_v10 }
 0x1e7   :  { %v237_v56 = vmul.f32 0.00390625, %v156_v10 }
 0x1e8   :  { %v184_v19 = vadd.f32 %v183_v15, %v182_v12  ;;  %v163_v21 = vadd.f32 %v162_v14, %v161_v11  ;;  %v189_v22 = vadd.f32 %v188_v16, %v187_v13  ;;  %v215_v23 = vpop.xlane.xlu0 %214  ;;  %v243_v27 = vmul.f32 0.00390625, %v241_v17 }
 0x1e9   :  { %v212_v26 = vpop.xlane.xlu1 %211  ;;  %v277_v63 = vsel %vm276_vm3, %v237_v56, 0.0 }
 0x1ea   :  { %v185_v24 = vrot.slane %v184_v19, 1  ;;  %v190_v25 = vrot.slane %v189_v22, 2  ;;  %v222_v18 = vadd.f32 %v215_v23, %v212_v26  ;;  %v242_v30 = vmul.f32 %v163_v21, %v163_v21 }
 0x1eb   :  { %v238_v2 = vmul.f32 0.00390625, %v163_v21 }
 0x1ec   :  { %v186_v28 = vadd.f32 %v185_v24, %v184_v19  ;;  %v191_v31 = vadd.f32 %v190_v25, %v189_v22  ;;  %v221_v29 = vpop.xlane.xlu0 %220  ;;  %v223_v20 = vrot.slane %v222_v18, 4  ;;  %v244_v38 = vmul.f32 0.00390625, %v242_v30 }
 0x1ed   :  { %v218_v34 = vpop.xlane.xlu1 %217  ;;  %v278_v14 = vsel %vm276_vm3, %v238_v2, 0.0 }
 0x1ee   :  { %v245_v32 = vsub.f32 %v186_v28, %v243_v27  ;;  %v192_v33 = vrot.slane %v191_v31, 1  ;;  %v224_v36 = vadd.f32 %v223_v20, %v222_v18  ;;  %v229_v37 = vadd.f32 %v221_v29, %v218_v34 }
 0x1f0   :  { %v247_v35 = vmax.f32 %v245_v32, 0.0  ;;  %v193_v39 = vadd.f32 %v192_v33, %v191_v31  ;;  %v230_v41 = vrot.slane %v229_v37, 4  ;;  %v225_v43 = vrot.slane %v224_v36, 2 }
 0x1f2   :  { %v250_v40 = vmul.f32 0.003921569, %v247_v35  ;;  %v246_v42 = vsub.f32 %v193_v39, %v244_v38  ;;  %v231_v45 = vadd.f32 %v230_v41, %v229_v37  ;;  %v226_v49 = vadd.f32 %v225_v43, %v224_v36 }
 0x1f4   :  { %332 = vrsqrt.f32 %v250_v40  ;;  %v248_v44 = vmax.f32 %v246_v42, 0.0  ;;  %v266_v46 = vadd.f32 1.0, %v250_v40  ;;  %v232_v50 = vrot.slane %v231_v45, 2 }
 0x1f5   :  { %v227_v53 = vrot.slane %v226_v49, 1  ;;  %vm254_vm5 = vcmp.eq.f32.partialorder %v250_v40, inf  ;;  %v257_v59 = vand.u32 2147483648, %v250_v40  ;;  %vm256_vm7 = vcmp.eq.f32.partialorder %v250_v40, 0.0 }
 0x1f6   :  { %v251_v48 = vmul.f32 0.003921569, %v248_v44  ;;  %334 = vrcp.f32 %v266_v46  ;;  %v233_v54 = vadd.f32 %v232_v50, %v231_v45 }
 0x1f7   :  { %v228_v58 = vadd.f32 %v227_v53, %v226_v49 }
 0x1f8   :  { %336 = vrsqrt.f32 %v251_v48  ;;  %v267_v51 = vadd.f32 1.0, %v251_v48  ;;  %v234_v60 = vrot.slane %v233_v54, 1  ;;  %vm261_vm11 = vcmp.eq.f32.partialorder %v251_v48, inf }
 0x1f9   :  { %v239_v4 = vsub.f32 0.0, %v228_v58  ;;  %v264_v8 = vand.u32 2147483648, %v251_v48  ;;  %vm263_vm12 = vcmp.eq.f32.partialorder %v251_v48, 0.0 }
 0x1fa   :  { %338 = vrcp.f32 %v267_v51  ;;  %v235_v7 = vadd.f32 %v234_v60, %v233_v54 }
 0x1fc   :  { %v240_v19 = vsub.f32 0.0, %v235_v7 }
 0x1fe   :  { %v333_v55 = vpop.eup %332 }
 0x1ff   :  { %v253_v57 = vmul.f32 %v333_v55, %v250_v40 }
 0x200   :  { %v335_v62 = vpop.eup %334 }
 0x201   :  { %v255_v61 = vsel %vm254_vm5, %v250_v40, %v253_v57  ;;  %v272_v10 = vsub.f32 1.0, %v335_v62 }
 0x202   :  { %v258_v0 = vsel %vm256_vm7, %v257_v59, %v255_v61  ;;  %v337_v1 = vpop.eup %336 }
 0x203   :  { %v280_v3 = vsel %vm279_vm4, %v258_v0, %v277_v63  ;;  %v260_v6 = vmul.f32 %v337_v1, %v251_v48 }
 0x204   :  { %v283_v5 = vsel %vm282_vm6, %v186_v28, %v280_v3  ;;  %v339_v13 = vpop.eup %338 }
 0x205   :  { %v286_v9 = vsel %vm285_vm8, %v239_v4, %v283_v5  ;;  %v262_v11 = vsel %vm261_vm11, %v251_v48, %v260_v6  ;;  %v273_v23 = vsub.f32 1.0, %v339_v13 }
 0x206   :  { %v289_v12 = vsel %vm288_vm9, %v247_v35, %v286_v9  ;;  %v265_v15 = vsel %vm263_vm12, %v264_v8, %v262_v11 }
 0x207   :  { %v292_v16 = vsel %vm291_vm10, %v272_v10, %v289_v12  ;;  %v281_v17 = vsel %vm279_vm4, %v265_v15, %v278_v14 }
 0x208   :  { %294 = vst [vmem:[#allocation5] sm:$0x1] %v292_v16  ;;  %v284_v21 = vsel %vm282_vm6, %v193_v39, %v281_v17 }
 0x209   :  { %v287_v22 = vsel %vm285_vm8, %v240_v19, %v284_v21 }
 0x20a   :  { %v290_v24 = vsel %vm288_vm9, %v248_v44, %v287_v22 }
 0x20b   :  { %v293_v25 = vsel %vm291_vm10, %v273_v23, %v290_v24 }
 0x20c   :  { %295 = vst [vmem:[#allocation5 + $0x1] sm:$0x1] %v293_v25 }
 0x20d   :  { %373 = shalt.err (!%p370_p12)
}
 0x20e   :  { %s374_s25 = scalar_lea.hbm %s477_s1, 32 }
 0x20f   :  { %p375_p13 = scmp.ne.s32.totalorder %s477_s1, %s374_s25  ;;  %p378_p0 = scmp.lt.u32.totalorder %s374_s25, %s477_s1 }
 0x211   :  { %p380_p1 = pnand %p378_p0, %p375_p13 }
 0x213   :  { %383 = shalt.err (!%p380_p1)
}
 0x214   :  { %s393_s30 = smov 16   ;;  %s394_s2 = smov 1  }
 0x215   :  { %307 = dma.vmem_to_hbm [thread:$0]  %s302_s21, 32, %s477_s1, [#allocation4], %s393_s30, %s393_s30, %s394_s2  }
 0x216   :  { %386 = dma.done.wait [#allocation4], 32  }
 0x217   :  { %387 = vsyncadd [#allocation4], 4294967264 }
 0x218   :  { %311 = vsyncpa [#allocation3], 1 }
 0x219   :  { %312 = vsyncpa [#allocation4], 1 }

</bundles_post_ra>
